<compile_context>
chip_gen: v5e
topology: v5e:2x2
jax: 0.10.0
libtpu: 0.0.40
codegen_flags: <defaults>
</compile_context>

<pallas_src>
import functools

import jax
import jax.numpy as jnp
from jax.experimental import pallas as pl
from jax.experimental.pallas import tpu as pltpu

_LANE = 128
_TN_TARGET = 8192  # 64 sublane-rows x 128 lanes per class per spatial tile


def _round_up(x, m):
    return ((x + m - 1) // m) * m


def _cdiv(a, b):
    return -(-a // b)


def _tversky_sums_kernel(x_ref, t_ref, out_ref, *, C, TS, TN,
                         tiles_per_split, n_valid, needs_mask):
    # x_ref:   (1, C, TS, 128)        logits tile (producer dtype)
    # t_ref:   (1, TS, 128) int32     labels tile (padded lanes hold class C)
    # out_ref: (1, 3*C, TS, 128) f32  lane-dense accumulators, resident across
    #          the innermost (spatial) grid axis:
    #            rows [0:C)    sum(onehot * p)   -> tp
    #            rows [C:2C)   sum(p)            -> tp + fp
    #            rows [2C:3C)  sum(onehot)       -> tp + fn
    @pl.when(pl.program_id(2) == 0)
    def _():
        out_ref[...] = jnp.zeros_like(out_ref)

    x = x_ref[0].astype(jnp.float32)                  # (C, TS, 128)
    t = t_ref[0]                                      # (TS, 128) int32

    # Softmax over the class (leading) axis: element-wise across per-class
    # vreg slabs (VPU); exp + approx reciprocal on the EUP.
    m = jnp.max(x, axis=0)                            # (TS, 128)
    e = jnp.exp(x - m[None])                          # (C, TS, 128)
    denom = jnp.sum(e, axis=0)                        # (TS, 128)
    p = e * pl.reciprocal(denom, approx=True)[None]   # (C, TS, 128)

    if needs_mask:
        # Zero out the padded spatial lanes (only present in the last tile;
        # n_valid / TN / tiles_per_split are static Python ints).
        base = (pl.program_id(1) * tiles_per_split + pl.program_id(2)) * TN
        pos = (jax.lax.broadcasted_iota(jnp.int32, (TS, _LANE), 0) * _LANE
               + jax.lax.broadcasted_iota(jnp.int32, (TS, _LANE), 1) + base)
        p = p * (pos < n_valid).astype(jnp.float32)[None]

    cls = jax.lax.broadcasted_iota(jnp.int32, (C, TS, _LANE), 0)
    onehot = (t[None] == cls).astype(jnp.float32)     # padded labels == C -> 0

    out_ref[0, 0:C] += onehot * p
    out_ref[0, C:2 * C] += p
    out_ref[0, 2 * C:3 * C] += onehot


def focal_tversky_loss(logits, target, n_classes, focal=True,
                       alpha=0.7, gamma=0.75):
    B, C, d, h, w = logits.shape
    assert C == n_classes
    assert target.shape[0] == B and target.shape[-3:] == (d, h, w)
    N = d * h * w

    # ---- tiling ------------------------------------------------------------
    if N <= _TN_TARGET:
        nsplit = 1                      # one tile covers the whole (padded) volume
        TN = _round_up(N, _LANE)
        tiles_per_split = 1
    else:
        nsplit = 2                      # keep both v7x TensorCores busy (P9)
        per_split = _cdiv(N, nsplit)
        tiles_per_split = _cdiv(per_split, _TN_TARGET)
        TN = _round_up(_cdiv(per_split, tiles_per_split), 8 * _LANE)
    TS = TN // _LANE
    N_pad = nsplit * tiles_per_split * TN
    S = N_pad // _LANE

    # Stream logits in their producer dtype (bf16 halves HBM traffic).
    x = logits.reshape(B, C, N)
    t = target.reshape(B, N).astype(jnp.int32)
    # NOTE: int8 labels (for C <= 127) would shave a further ~15% of HBM bytes.
    if N_pad != N:
        x = jnp.pad(x, ((0, 0), (0, 0), (0, N_pad - N)))
        t = jnp.pad(t, ((0, 0), (0, N_pad - N)), constant_values=C)
    x = x.reshape(B, C, S, _LANE)
    t = t.reshape(B, S, _LANE)

    kernel = functools.partial(
        _tversky_sums_kernel, C=C, TS=TS, TN=TN,
        tiles_per_split=tiles_per_split, n_valid=N,
        needs_mask=(N_pad != N))

    grid_spec = pltpu.PrefetchScalarGridSpec(
        num_scalar_prefetch=0,
        grid=(B, nsplit, tiles_per_split),
        in_specs=[
            pl.BlockSpec((1, C, TS, _LANE),
                         lambda b, s, n: (b, 0, s * tiles_per_split + n, 0)),
            pl.BlockSpec((1, TS, _LANE),
                         lambda b, s, n: (b, s * tiles_per_split + n, 0)),
        ],
        out_specs=pl.BlockSpec((1, 3 * C, TS, _LANE),
                               lambda b, s, n: (b * nsplit + s, 0, 0, 0)),
    )

    acc = pl.pallas_call(
        kernel,
        out_shape=jax.ShapeDtypeStruct((B * nsplit, 3 * C, TS, _LANE),
                                       jnp.float32),
        grid_spec=grid_spec,
        compiler_params=pltpu.CompilerParams(
            dimension_semantics=("parallel", "parallel", "arbitrary"),
            vmem_limit_bytes=32 * 1024 * 1024),
    )(x, t)

    # ---- tiny scalar epilogue in JAX ----------------------------------------
    acc = acc.reshape(B, nsplit, 3, C, TS * _LANE)
    sums = jnp.sum(acc, axis=(1, 4))                  # (B, 3, C)
    tp, sum_p, cnt = sums[:, 0], sums[:, 1], sums[:, 2]
    fn = cnt - tp                                     # sum(onehot * (1 - p))
    fp = sum_p - tp                                   # sum((1 - onehot) * p)

    smooth = 1.0
    tversky = jnp.sum((tp + smooth) /
                      (tp + alpha * fn + (1.0 - alpha) * fp + smooth))
    if focal:
        # Matches torch.pow: negative base with fractional exponent -> NaN
        # (the reference module's focal path behaves identically).
        return jnp.power(1.0 - tversky, gamma)
    return 1.0 - tversky


def _reference(logits, target, n_classes, focal=True, alpha=0.7, gamma=0.75):
    B, C = logits.shape[:2]
    p = jax.nn.softmax(logits.astype(jnp.float32), axis=1).reshape(B, C, -1)
    labels = target.reshape(B, -1)
    onehot = (labels[:, None, :] ==
              jnp.arange(C, dtype=jnp.int32)[None, :, None]).astype(jnp.float32)
    tp = jnp.sum(onehot * p, axis=2)
    fn = jnp.sum(onehot * (1.0 - p), axis=2)
    fp = jnp.sum((1.0 - onehot) * p, axis=2)
    smooth = 1.0
    tv = jnp.sum((tp + smooth) /
                 (tp + alpha * fn + (1.0 - alpha) * fp + smooth))
    return jnp.power(1.0 - tv, gamma) if focal else 1.0 - tv


if __name__ == "__main__":
    key = jax.random.PRNGKey(0)

    cases = [
        (2, 4, (4, 8, 8)),      # N = 256   : single lane-aligned tile
        (2, 4, (3, 5, 7)),      # N = 105   : padding + in-kernel lane mask
        (2, 4, (16, 48, 48)),   # N = 36864 : 2 parallel splits x 3 tiles each
    ]
    for i, (B, C, (d, h, w)) in enumerate(cases):
        k1, k2 = jax.random.split(jax.random.fold_in(key, i))
        logits = jax.random.normal(k1, (B, C, d, h, w), dtype=jnp.float32)
        target = jax.random.randint(k2, (B, 1, d, h, w), 0, C, dtype=jnp.int32)

        for focal in (True, False):
            got = focal_tversky_loss(logits, target, C, focal=focal)
            jax.block_until_ready(got)
            want = _reference(logits, target, C, focal=focal)
            assert jnp.allclose(got, want, rtol=5e-3, atol=5e-3,
                                equal_nan=True), (i, focal, got, want)

    print("KERNEL_OK")
</pallas_src>

<mosaic_0001>
module attributes {stable_mosaic.version = 11 : i64} {
  func.func @_tversky_sums_kernel(%arg0: i32, %arg1: i32, %arg2: i32, %arg3: memref<1x4x2x128xf32, #tpu.memory_space<vmem>>, %arg4: memref<1x2x128xi32, #tpu.memory_space<vmem>>, %arg5: memref<1x12x2x128xf32, #tpu.memory_space<vmem>>) attributes {dimension_semantics = [#tpu.dimension_semantics<parallel>, #tpu.dimension_semantics<parallel>, #tpu.dimension_semantics<arbitrary>], iteration_bounds = array<i64: 2, 1, 1>, scalar_prefetch = 0 : i64, scratch_operands = 0 : i64, tpu.core_type = #tpu.core_type<tc>, window_params = [{transform_indices = @transform_0, window_bounds = array<i64: 1, 4, 2, 128>}, {transform_indices = @transform_1, window_bounds = array<i64: 1, 2, 128>}, {transform_indices = @transform_2, window_bounds = array<i64: 1, 12, 2, 128>}]} {
    %c0_i32 = arith.constant 0 : i32
    %0 = arith.cmpi eq, %arg2, %c0_i32 : i32
    %1 = arith.extui %0 : i1 to i32
    %c0_i32_0 = arith.constant 0 : i32
    %2 = arith.cmpi ne, %1, %c0_i32_0 : i32
    scf.if %2 {
      %cst_30 = arith.constant 0.000000e+00 : f32
      %42 = vector.broadcast %cst_30 : f32 to vector<1x12x2x128xf32>
      %c0_31 = arith.constant 0 : index
      %c0_32 = arith.constant 0 : index
      %c0_33 = arith.constant 0 : index
      %c0_34 = arith.constant 0 : index
      %43 = vector.load %arg5[%c0_31, %c0_32, %c0_33, %c0_34] : memref<1x12x2x128xf32, #tpu.memory_space<vmem>>, vector<1x12x2x128xf32>
      tpu.vector_store %arg5[%c0_31, %c0_32, %c0_33, %c0_34], %42 {strides = array<i32>} : memref<1x12x2x128xf32, #tpu.memory_space<vmem>>, vector<1x12x2x128xf32>,
    } else {
    }
    %c0 = arith.constant 0 : index
    %c0_1 = arith.constant 0 : index
    %c0_2 = arith.constant 0 : index
    %c0_3 = arith.constant 0 : index
    %3 = vector.load %arg3[%c0, %c0_1, %c0_2, %c0_3] : memref<1x4x2x128xf32, #tpu.memory_space<vmem>>, vector<1x4x2x128xf32>
    %4 = vector.shape_cast %3 : vector<1x4x2x128xf32> to vector<4x2x128xf32>
    %c0_4 = arith.constant 0 : index
    %c0_5 = arith.constant 0 : index
    %c0_6 = arith.constant 0 : index
    %5 = vector.load %arg4[%c0_4, %c0_5, %c0_6] : memref<1x2x128xi32, #tpu.memory_space<vmem>>, vector<1x2x128xi32>
    %6 = vector.shape_cast %5 : vector<1x2x128xi32> to vector<2x128xi32>
    %cst = arith.constant dense<0xFF800000> : vector<2x128xf32>
    %7 = vector.multi_reduction <maximumf>, %4, %cst [0] : vector<4x2x128xf32> to vector<2x128xf32>
    %8 = vector.shape_cast %7 : vector<2x128xf32> to vector<1x2x128xf32>
    %9 = vector.broadcast %8 : vector<1x2x128xf32> to vector<4x2x128xf32>
    %10 = arith.subf %4, %9 : vector<4x2x128xf32>
    %11 = math.exp %10 : vector<4x2x128xf32>
    %cst_7 = arith.constant dense<0.000000e+00> : vector<2x128xf32>
    %12 = vector.multi_reduction <add>, %11, %cst_7 [0] : vector<4x2x128xf32> to vector<2x128xf32>
    %13 = tpu.reciprocal %12 {approx = true} : vector<2x128xf32> -> vector<2x128xf32>
    %14 = vector.shape_cast %13 : vector<2x128xf32> to vector<1x2x128xf32>
    %15 = vector.broadcast %14 : vector<1x2x128xf32> to vector<4x2x128xf32>
    %16 = arith.mulf %11, %15 : vector<4x2x128xf32>
    %17 = tpu.iota {dimensions = array<i32: 0>} : vector<4x2x128xi32>
    %18 = vector.shape_cast %6 : vector<2x128xi32> to vector<1x2x128xi32>
    %19 = vector.broadcast %18 : vector<1x2x128xi32> to vector<4x2x128xi32>
    %20 = arith.cmpi eq, %19, %17 : vector<4x2x128xi32>
    %21 = arith.extui %20 : vector<4x2x128xi1> to vector<4x2x128xi32>
    %22 = arith.sitofp %21 : vector<4x2x128xi32> to vector<4x2x128xf32>
    %c0_8 = arith.constant 0 : index
    %c0_9 = arith.constant 0 : index
    %c0_10 = arith.constant 0 : index
    %c0_11 = arith.constant 0 : index
    %23 = vector.load %arg5[%c0_8, %c0_9, %c0_10, %c0_11] : memref<1x12x2x128xf32, #tpu.memory_space<vmem>>, vector<1x4x2x128xf32>
    %24 = vector.shape_cast %23 : vector<1x4x2x128xf32> to vector<4x2x128xf32>
    %25 = arith.mulf %22, %16 : vector<4x2x128xf32>
    %26 = arith.addf %24, %25 : vector<4x2x128xf32>
    %c0_12 = arith.constant 0 : index
    %c0_13 = arith.constant 0 : index
    %c0_14 = arith.constant 0 : index
    %c0_15 = arith.constant 0 : index
    %27 = vector.load %arg5[%c0_12, %c0_13, %c0_14, %c0_15] : memref<1x12x2x128xf32, #tpu.memory_space<vmem>>, vector<1x4x2x128xf32>
    %28 = vector.shape_cast %27 : vector<1x4x2x128xf32> to vector<4x2x128xf32>
    %29 = vector.shape_cast %26 : vector<4x2x128xf32> to vector<1x4x2x128xf32>
    tpu.vector_store %arg5[%c0_12, %c0_13, %c0_14, %c0_15], %29 {strides = array<i32>} : memref<1x12x2x128xf32, #tpu.memory_space<vmem>>, vector<1x4x2x128xf32>,
    %c0_16 = arith.constant 0 : index
    %c4 = arith.constant 4 : index
    %c0_17 = arith.constant 0 : index
    %c0_18 = arith.constant 0 : index
    %30 = vector.load %arg5[%c0_16, %c4, %c0_17, %c0_18] : memref<1x12x2x128xf32, #tpu.memory_space<vmem>>, vector<1x4x2x128xf32>
    %31 = vector.shape_cast %30 : vector<1x4x2x128xf32> to vector<4x2x128xf32>
    %32 = arith.addf %31, %16 : vector<4x2x128xf32>
    %c0_19 = arith.constant 0 : index
    %c4_20 = arith.constant 4 : index
    %c0_21 = arith.constant 0 : index
    %c0_22 = arith.constant 0 : index
    %33 = vector.load %arg5[%c0_19, %c4_20, %c0_21, %c0_22] : memref<1x12x2x128xf32, #tpu.memory_space<vmem>>, vector<1x4x2x128xf32>
    %34 = vector.shape_cast %33 : vector<1x4x2x128xf32> to vector<4x2x128xf32>
    %35 = vector.shape_cast %32 : vector<4x2x128xf32> to vector<1x4x2x128xf32>
    tpu.vector_store %arg5[%c0_19, %c4_20, %c0_21, %c0_22], %35 {strides = array<i32>} : memref<1x12x2x128xf32, #tpu.memory_space<vmem>>, vector<1x4x2x128xf32>,
    %c0_23 = arith.constant 0 : index
    %c8 = arith.constant 8 : index
    %c0_24 = arith.constant 0 : index
    %c0_25 = arith.constant 0 : index
    %36 = vector.load %arg5[%c0_23, %c8, %c0_24, %c0_25] : memref<1x12x2x128xf32, #tpu.memory_space<vmem>>, vector<1x4x2x128xf32>
    %37 = vector.shape_cast %36 : vector<1x4x2x128xf32> to vector<4x2x128xf32>
    %38 = arith.addf %37, %22 : vector<4x2x128xf32>
    %c0_26 = arith.constant 0 : index
    %c8_27 = arith.constant 8 : index
    %c0_28 = arith.constant 0 : index
    %c0_29 = arith.constant 0 : index
    %39 = vector.load %arg5[%c0_26, %c8_27, %c0_28, %c0_29] : memref<1x12x2x128xf32, #tpu.memory_space<vmem>>, vector<1x4x2x128xf32>
    %40 = vector.shape_cast %39 : vector<1x4x2x128xf32> to vector<4x2x128xf32>
    %41 = vector.shape_cast %38 : vector<4x2x128xf32> to vector<1x4x2x128xf32>
    tpu.vector_store %arg5[%c0_26, %c8_27, %c0_28, %c0_29], %41 {strides = array<i32>} : memref<1x12x2x128xf32, #tpu.memory_space<vmem>>, vector<1x4x2x128xf32>,
    return
  }
  func.func @transform_0(%arg0: i32, %arg1: i32, %arg2: i32) -> (i32, i32, i32, i32) {
    %c1_i32 = arith.constant 1 : i32
    %0 = arith.muli %arg1, %c1_i32 : i32
    %1 = arith.addi %0, %arg2 : i32
    %c0_i32 = arith.constant 0 : i32
    %c0_i32_0 = arith.constant 0 : i32
    %c0_i32_1 = arith.constant 0 : i32
    return %arg0, %c0_i32, %1, %c0_i32_0 : i32, i32, i32, i32
  }
  func.func @transform_1(%arg0: i32, %arg1: i32, %arg2: i32) -> (i32, i32, i32) {
    %c1_i32 = arith.constant 1 : i32
    %0 = arith.muli %arg1, %c1_i32 : i32
    %1 = arith.addi %0, %arg2 : i32
    %c0_i32 = arith.constant 0 : i32
    %c0_i32_0 = arith.constant 0 : i32
    return %arg0, %1, %c0_i32 : i32, i32, i32
  }
  func.func @transform_2(%arg0: i32, %arg1: i32, %arg2: i32) -> (i32, i32, i32, i32) {
    %c1_i32 = arith.constant 1 : i32
    %0 = arith.muli %arg0, %c1_i32 : i32
    %1 = arith.addi %0, %arg1 : i32
    %c0_i32 = arith.constant 0 : i32
    %c0_i32_0 = arith.constant 0 : i32
    %c0_i32_1 = arith.constant 0 : i32
    %c0_i32_2 = arith.constant 0 : i32
    return %1, %c0_i32, %c0_i32_0, %c0_i32_1 : i32, i32, i32, i32
  }
}

</mosaic_0001>

<bundles_post_ra>
// kernel: tpu_custom_call.1
= control target key start
LH: loop header
LB: loop body
LE: loop exit
PB: predicated region body
PF: predicated region fallthrough
CT: control target
= control target key end

     0   :  { %7 = vsyncpa [#allocation3], 0  ;;  %s950_s0 = inlined_call_operand.hbm [shape: f32[2,4,2,128], index: 0, kind: input, shape index: {}]   ;;  %s951_s1 = inlined_call_operand.hbm [shape: s32[2,2,128], index: 1, kind: input, shape index: {}]   ;;  %s952_s2 = inlined_call_operand.hbm [shape: f32[2,12,2,128], index: 2, kind: output, shape index: {}]  }
   0x1   :  { %9 = vsyncpa [#allocation3 + $0x1], 0 }
   0x2   :  { %10 = vsyncpa [#allocation6], 0 }
   0x3   :  { %12 = vsyncpa [#allocation6 + $0x1], 0 }
   0x4   :  { %13 = vsyncpa [#allocation4], 0 }
   0x5   :  { %15 = vsyncpa [#allocation4 + $0x1], 0  ;;  %s764_s9 = smov 0   ;;  %s766_s10 = smov 0  }
   0x6   :  { %s768_s11 = smov 0   ;;  %s770_s12 = smov 0  }
   0x7   :  { %s772_s13 = smov 0   ;;  %s774_s14 = smov 0  }
   0x8 LB: > { %s476_s15 = sadd.s32 4294967295, %s742_s14   ;;  %s477_s16 = sadd.s32 4294967294, %s742_s14   ;;  %s742_s14 = sphi %s774_s14, %s21_s14   ;;  %s738_s13 = sphi %s772_s13, %s962_s13   ;;  %s734_s12 = sphi %s770_s12, %s961_s12   ;;  %s730_s11 = sphi %s768_s11, %s960_s11   ;;  %s726_s10 = sphi %s766_s10, %s959_s10   ;;  %s722_s9 = sphi %s764_s9, %s958_s9  }
   0x9   : > { %s40_s17 = sadd.s32 1, %s738_s13  ;;  %s51_s18 = sadd.s32 1, %s730_s11 }
   0xa   : > { %p42_p0 = scmp.ge.s32.totalorder %s40_s17, 2  ;;  %p58_p1 = scmp.ne.s32.totalorder %s730_s11, %s726_s10 }
   0xb   : > { %p59_p2 = scmp.eq.s32.totalorder %s742_s14, 0  ;;  %p64_p3 = scmp.ne.s32.totalorder %s726_s10, %s722_s9 }
   0xc   : > { %s964_s17 = smov (%p42_p0, %s40_s17), 0  ;;  %p65_p5 = scmp.eq.s32.totalorder %s476_s15, 0 }
   0xd   : > { %p805_p4 = por %p59_p2, %p58_p1  ;;  %s46_s20 = ssub.s32 %s738_s13, %s964_s17 }
   0xe   : > { %p120_p6 = scmp.eq.s32.totalorder %s476_s15, 1  ;;  %p49_p7 = scmp.eq.s32.totalorder %s46_s20, 0 }
   0xf   : > { %p811_p8 = por %p65_p5, %p64_p3  ;;  %p126_p10 = scmp.eq.s32.totalorder %s477_s16, 1 }
  0x10   : > { %p815_p9 = por %p120_p6, %p58_p1  ;;  %p479_p12 = scmp.ge.s32.totalorder %s742_s14, 2 }
  0x11   : > { %s820_s23 = scalar_select %p49_p7, %s730_s11, %s51_s18  }
  0x12   : > { %p822_p11 = por %p126_p10, %p64_p3  ;;  %p531_p13 = scmp.lt.s32.totalorder %s742_s14, 2 }
  0x13   : > { %s146_s25 = sand.u32 1, %s730_s11   ;;  %s511_s27 = sshll.u32 %s738_s13, 3 }
  0x14   : > { %s480_s26 = sshll.u32 %s146_s25, 3  ;;  %s157_s30 = scalar_lea.hbm %s950_s0, %s511_s27 }
  0x15   : > { %s150_s3 = scalar_lea.vmem [#allocation2], %s480_s26  ;;  %s158_s5 = sshll.u32 %s157_s30, 4  ;;  %s159_s5 = int_to_ptr.hbm [resolvable:$true] %s158_s5 }
  0x16   : > { %s160_s4 = sshll.u32 %s150_s3, 4  ;;  %p835_p0 = pnand %p531_p13, %p805_p4  ;;  %s161_s4 = int_to_ptr.vmem [resolvable:$true] %s160_s4 }
  0x17   : > { %p485_p1 = scmp.ge.s32.totalorder %s742_s14, 1  ;;  %s147_s7 = scalar_lea.sflag [#allocation3], %s146_s25 }
  0x18   : > { %s744_s8 = smov 32   ;;  %s745_s15 = smov 2  }
  0x19   : > { %523 = dma.hbm_to_vmem [thread:$0]  (!%p835_p0), %s159_s5, 128, %s161_s4, %s147_s7, %s744_s8, %s744_s8, %s745_s15  }
  0x1a   : > { %p189_p2 = scmp.lt.s32.totalorder %s742_s14, 3  ;;  %s483_s16 = sshll.u32 %s146_s25, 1 }
  0x1b   : > { %s484_s18 = sshll.u32 %s738_s13, 1  ;;  %s174_s27 = scalar_lea.vmem [#allocation5], %s483_s16 }
  0x1c   : > { %p190_p3 = pnand %p485_p1, %p189_p2  ;;  %s180_s19 = scalar_lea.hbm %s951_s1, %s484_s18 }
  0x1d   : > { %s184_s28 = sshll.u32 %s174_s27, 4  ;;  %s182_s29 = sshll.u32 %s180_s19, 4  ;;  %s185_s28 = int_to_ptr.vmem [resolvable:$true] %s184_s28  ;;  %s183_s29 = int_to_ptr.hbm [resolvable:$true] %s182_s29 }
  0x1e   : > { %s171_s30 = scalar_lea.sflag [#allocation6], %s146_s25  ;;  %193 = sbr.rel (%p190_p3) target bundleno = 88 (0x58), region = 28 }
  0x1f   : > { %526 = dma.hbm_to_vmem [thread:$0]  (!%p835_p0), %s183_s29, 32, %s185_s28, %s171_s30  }
  0x20   : > { %s850_s3 = sand.u32 (!%p190_p3), 1, %s726_s10  }
  0x21   : > { %s486_s4 = sshll.u32 (!%p190_p3), %s850_s3, 3  ;;  %s196_s5 = scalar_lea.sflag (!%p190_p3), [#allocation3], %s850_s3 }
  0x22   : > { %s199_s7 = scalar_lea.vmem (!%p190_p3), [#allocation2], %s486_s4 }
  0x23   : > { %709 = dma.done.wait (%p811_p8), %s196_s5, 128  }
  0x24   : > { %711 = vsyncadd (%p811_p8), %s196_s5, 4294967168  ;;  %s487_s25 = sshll.u32 %s850_s3, 1  ;;  %s206_s6 = scalar_lea.sflag [#allocation6], %s850_s3 }
  0x25   : > { %s209_s8 = scalar_lea.vmem [#allocation5], %s487_s25 }
  0x26   : > { %713 = dma.done.wait (%p811_p8), %s206_s6, 32  }
  0x27   : > { %715 = vsyncadd (%p811_p8), %s206_s6, 4294967264  ;;  %s512_s15 = smul.u32 24, %s850_s3  ;;  %v746_v0 = vmov 0.0   ;;  %vm260_vm0 = vcmask 1041408   ;;  %v255_v1 = vld [vmem:[%s199_s7] sm:$0x3] }
  0x28   : > { %v256_v2 = vld [vmem:[%s199_s7 + $0x2] sm:$0x3]  ;;  %v257_v3 = vld [vmem:[%s199_s7 + $0x4] sm:$0x3]  ;;  %v258_v4 = vld [vmem:[%s199_s7 + $0x6] sm:$0x3] }
  0x29   : > { %s865_s16 = scalar_lea.vmem [#allocation7], %s512_s15  ;;  %v261_v5 = vsel %vm260_vm0, %v255_v1, -inf  ;;  %v262_v6 = vsel %vm260_vm0, %v256_v2, -inf  ;;  %v263_v7 = vsel %vm260_vm0, %v257_v3, -inf  ;;  %v264_v8 = vsel %vm260_vm0, %v258_v4, -inf  ;;  %s513_s21 = smul.u32 24, %s734_s12 }
  0x2a   : > { %243 = vst [vmem:[%s865_s16] sm:$0x3] %v746_v0  ;;  %v265_v9 = vmax.f32 %v261_v5, %v262_v6  ;;  %v259_v10 = vld [vmem:[%s209_s8] sm:$0x3]  ;;  %v266_v11 = vmax.f32 %v263_v7, %v264_v8  ;;  %s360_s26 = sshll.u32 %s865_s16, 4  ;;  %s347_s27 = scalar_lea.sflag [#allocation4], %s850_s3  ;;  %s361_s26 = int_to_ptr.vmem [resolvable:$true] %s360_s26 }
  0x2b   : > { %244 = vst [vmem:[%s865_s16 + $0x2] sm:$0x3] %v746_v0  ;;  %vm292_vm1 = vcmp.eq.s32.totalorder %v259_v10, 0  ;;  %vm293_vm2 = vcmp.eq.s32.totalorder %v259_v10, 1  ;;  %vm294_vm3 = vcmp.eq.s32.totalorder %v259_v10, 2  ;;  %vm295_vm4 = vcmp.eq.s32.totalorder %v259_v10, 3  ;;  %s359_s20 = scalar_lea.hbm %s952_s2, %s513_s21 }
  0x2c   : > { %245 = vst [vmem:[%s865_s16 + $0x4] sm:$0x3] %v746_v0  ;;  %v267_v12 = vmax.f32 %v265_v9, %v266_v11  ;;  %v488_v21 = vsel %vm292_vm1, 1.0, %v746_v0  ;;  %v489_v23 = vsel %vm293_vm2, 1.0, %v746_v0  ;;  %v490_v26 = vsel %vm294_vm3, 1.0, %v746_v0  ;;  %s362_s19 = sshll.u32 %s359_s20, 4  ;;  %s363_s19 = int_to_ptr.hbm [resolvable:$true] %s362_s19 }
  0x2d   : > { %246 = vst [vmem:[%s865_s16 + $0x6] sm:$0x3] %v746_v0  ;;  %v491_v29 = vsel %vm295_vm4, 1.0, %v746_v0  ;;  %s670_s28 = sshra.s32 %s363_s19, 4  ;;  %s676_s5 = scalar_lea.hbm %s952_s2, 48  ;;  %s671_s28 = int_to_ptr.hbm [resolvable:$true] %s670_s28 }
  0x2e   : > { %247 = vst [vmem:[%s865_s16 + $0x8] sm:$0x3] %v746_v0  ;;  %v268_v13 = vsub.f32 %v255_v1, %v267_v12  ;;  %v269_v14 = vsub.f32 %v256_v2, %v267_v12  ;;  %v270_v15 = vsub.f32 %v257_v3, %v267_v12  ;;  %v271_v16 = vsub.f32 %v258_v4, %v267_v12  ;;  %s672_s29 = scalar_lea.hbm %s671_s28, 24  ;;  %p677_p7 = scmp.lt.s32.totalorder %s671_s28, %s952_s2 }
  0x2f   : > { %248 = vst [vmem:[%s865_s16 + $0xa] sm:$0x3] %v746_v0  ;;  %p673_p4 = scmp.ne.s32.totalorder %s671_s28, %s672_s29  ;;  %p678_p8 = scmp.lt.s32.totalorder %s676_s5, %s672_s29 }
  0x30   : > { %249 = vst [vmem:[%s865_s16 + $0xc] sm:$0x3] %v746_v0  ;;  %v272_v17 = vmul.f32 1.442695, %v268_v13  ;;  %v274_v18 = vmul.f32 1.442695, %v269_v14 }
  0x31   : > { %250 = vst [vmem:[%s865_s16 + $0xe] sm:$0x3] %v746_v0  ;;  %v276_v19 = vmul.f32 1.442695, %v270_v15  ;;  %v278_v20 = vmul.f32 1.442695, %v271_v16  ;;  %p674_p5 = pnand %p673_p4, %p815_p9  ;;  %p679_p10 = por %p678_p8, %p677_p7 }
  0x32   : > { %251 = vst [vmem:[%s865_s16 + $0x10] sm:$0x3] %v746_v0  ;;  %586 = vpow2.f32 %v272_v17  ;;  %v304_v50 = vld [vmem:[%s865_s16] sm:$0x3]  ;;  %v305_v51 = vld [vmem:[%s865_s16 + $0x2] sm:$0x3] }
  0x33   : > { %252 = vst [vmem:[%s865_s16 + $0x12] sm:$0x3] %v746_v0  ;;  %588 = vpow2.f32 %v274_v18  ;;  %v306_v52 = vld [vmem:[%s865_s16 + $0x4] sm:$0x3]  ;;  %p675_p6 = pneg %p674_p5 }
  0x34   : > { %253 = vst [vmem:[%s865_s16 + $0x14] sm:$0x3] %v746_v0  ;;  %590 = vpow2.f32 %v276_v19  ;;  %v307_v56 = vld [vmem:[%s865_s16 + $0x6] sm:$0x3] }
  0x35   : > { %254 = vst [vmem:[%s865_s16 + $0x16] sm:$0x3] %v746_v0  ;;  %592 = vpow2.f32 %v278_v20  ;;  %v492_v49 = vld [vmem:[%s865_s16 + $0x8] sm:$0x3]  ;;  %p680_p13 = pnand %p679_p10, %p675_p6 }
  0x36   : > { %v493_v59 = vld [vmem:[%s865_s16 + $0xa] sm:$0x3] }
  0x37   : > { %v494_v63 = vld [vmem:[%s865_s16 + $0xc] sm:$0x3] }
  0x38   : > { %v587_v33 = vpop.eup %586  ;;  %v495_v1 = vld [vmem:[%s865_s16 + $0xe] sm:$0x3] }
  0x39   : > { %v500_v22 = vld [vmem:[%s865_s16 + $0x10] sm:$0x3]  ;;  %v589_v34 = vpop.eup %588  ;;  %v280_v35 = vsel %vm260_vm0, %v587_v33, 0.0 }
  0x3a   : > { %v338_v24 = vadd.f32 %v500_v22, %v488_v21  ;;  %v501_v25 = vld [vmem:[%s865_s16 + $0x12] sm:$0x3]  ;;  %v591_v36 = vpop.eup %590  ;;  %v281_v37 = vsel %vm260_vm0, %v589_v34, 0.0 }
  0x3b   : > { %v339_v27 = vadd.f32 %v501_v25, %v489_v23  ;;  %v502_v28 = vld [vmem:[%s865_s16 + $0x14] sm:$0x3]  ;;  %v593_v38 = vpop.eup %592  ;;  %v282_v39 = vadd.f32 %v281_v37, %v280_v35  ;;  %v283_v40 = vsel %vm260_vm0, %v591_v36, 0.0 }
  0x3c   : > { %504 = vst [vmem:[%s865_s16 + $0x10] sm:$0x3] %v338_v24  ;;  %v340_v30 = vadd.f32 %v502_v28, %v490_v26  ;;  %v503_v31 = vld [vmem:[%s865_s16 + $0x16] sm:$0x3]  ;;  %v285_v41 = vsel %vm260_vm0, %v593_v38, 0.0 }
  0x3d   : > { %505 = vst [vmem:[%s865_s16 + $0x12] sm:$0x3] %v339_v27  ;;  %v341_v32 = vadd.f32 %v503_v31, %v491_v29  ;;  %v284_v42 = vadd.f32 %v283_v40, %v282_v39 }
  0x3e   : > { %506 = vst [vmem:[%s865_s16 + $0x14] sm:$0x3] %v340_v30 }
  0x3f   : > { %507 = vst [vmem:[%s865_s16 + $0x16] sm:$0x3] %v341_v32  ;;  %v286_v43 = vadd.f32 %v285_v41, %v284_v42 }
  0x41   : > { %594 = vrcp.f32 %v286_v43 }
  0x47   : > { %v595_v44 = vpop.eup %594 }
  0x48   : > { %v288_v45 = vmul.f32 %v595_v44, %v587_v33  ;;  %v289_v46 = vmul.f32 %v595_v44, %v589_v34  ;;  %v290_v47 = vmul.f32 %v595_v44, %v591_v36  ;;  %v291_v48 = vmul.f32 %v595_v44, %v593_v38 }
  0x4a   : > { %v308_v53 = vmul.f32 %v488_v21, %v288_v45  ;;  %v309_v54 = vmul.f32 %v489_v23, %v289_v46  ;;  %v310_v55 = vmul.f32 %v490_v26, %v290_v47  ;;  %v311_v57 = vmul.f32 %v491_v29, %v291_v48 }
  0x4b   : > { %v325_v58 = vadd.f32 %v492_v49, %v288_v45  ;;  %v326_v2 = vadd.f32 %v493_v59, %v289_v46  ;;  %v327_v3 = vadd.f32 %v494_v63, %v290_v47  ;;  %v328_v4 = vadd.f32 %v495_v1, %v291_v48 }
  0x4c   : > { %v312_v60 = vadd.f32 %v308_v53, %v304_v50  ;;  %v313_v61 = vadd.f32 %v309_v54, %v305_v51  ;;  %v314_v62 = vadd.f32 %v310_v55, %v306_v52  ;;  %v315_v0 = vadd.f32 %v311_v57, %v307_v56 }
  0x4d   : > { %496 = vst [vmem:[%s865_s16 + $0x8] sm:$0x3] %v325_v58 }
  0x4e   : > { %316 = vst [vmem:[%s865_s16] sm:$0x3] %v312_v60 }
  0x4f   : > { %317 = vst [vmem:[%s865_s16 + $0x2] sm:$0x3] %v313_v61 }
  0x50   : > { %318 = vst [vmem:[%s865_s16 + $0x4] sm:$0x3] %v314_v62 }
  0x51   : > { %319 = vst [vmem:[%s865_s16 + $0x6] sm:$0x3] %v315_v0 }
  0x52   : > { %497 = vst [vmem:[%s865_s16 + $0xa] sm:$0x3] %v326_v2 }
  0x53   : > { %498 = vst [vmem:[%s865_s16 + $0xc] sm:$0x3] %v327_v3 }
  0x54   : > { %499 = vst [vmem:[%s865_s16 + $0xe] sm:$0x3] %v328_v4 }
  0x55   : > { %683 = shalt.err (!%p680_p13)
}
  0x56   : > { %s747_s3 = smov 32   ;;  %s748_s6 = smov 2  }
  0x57   : > { %518 = dma.vmem_to_hbm [thread:$0]  (%p815_p9), %s361_s26, 384, %s363_s19, %s347_s27, %s747_s3, %s747_s3, %s748_s6  }
  0x58 PF: > { %s377_s8 = sand.u32 1, %s722_s9   ;;  %p528_p0 = pnand %p479_p12, %p822_p11 }
  0x59   : > { %s378_s15 = scalar_lea.sflag [#allocation4], %s377_s8 }
  0x5a   : > { %p529_p1 = pneg %p528_p0 }
  0x5c   : > { %717 = dma.done.wait (%p529_p1), %s378_s15, 384  }
  0x5d   : > { %719 = vsyncadd (%p529_p1), %s378_s15, 4294966912  ;;  %s21_s14 = sadd.s32 1, %s742_s14   ;;  %s958_s9 = smov %s726_s10 }
  0x5e   : > { %p18_p2 = scmp.ge.s32.totalorder %s21_s14, 4   ;;  %s959_s10 = smov %s730_s11 }
  0x5f   : > { %s960_s11 = smov %s820_s23  ;;  %s961_s12 = smov %s738_s13 }
  0x60   : > { %s962_s13 = smov %s964_s17  ;;  %20 = sbr.rel (!%p18_p2) target bundleno = 8 (0x8), region = 92 }
  0x65   :  { %384 = vsyncpa [#allocation3], 1 }
  0x66   :  { %386 = vsyncpa [#allocation3 + $0x1], 1 }
  0x67   :  { %387 = vsyncpa [#allocation6], 1 }
  0x68   :  { %389 = vsyncpa [#allocation6 + $0x1], 1 }
  0x69   :  { %390 = vsyncpa [#allocation4], 1 }
  0x6a   :  { %392 = vsyncpa [#allocation4 + $0x1], 1 }

</bundles_post_ra>
